<compile_context>
chip_gen: v7x
topology: tpu7x:2x2x1
jax: 0.10.0
libtpu: 0.0.40
codegen_flags: <defaults>
</compile_context>

<pallas_src>
import math

import jax
import jax.numpy as jnp
import numpy as np
from jax.experimental import pallas as pl
from jax.experimental.pallas import tpu as pltpu

DTYPE = jnp.float32          # stands in for config.DTYPE (bf16 also supported)
_SCALE = 1.0 / 255.0         # hoisted reciprocal -> single VPU multiply in-kernel


def _step_byte_budget():
    """Combined (input + output) bytes per grid step.

    Double-buffered (x2) this stays under the 32 MiB scoped-VMEM default on
    every generation; on v5e/v6e (128 MiB physical VMEM) we allow a bit more to
    further amortize the ~0.35 us per-step pipeline overhead.
    """
    try:
        vmem = pltpu.get_tpu_info().vmem_capacity_bytes
    except Exception:
        vmem = 0
    return (12 << 20) if vmem >= (96 << 20) else (8 << 20)


_STEP_BYTES = _step_byte_budget()


def _round_down(x, m):
    return (x // m) * m


def _pick_rows_block(rows, row_bytes):
    """Row-block size for a (rows, width) elementwise pass.

    Multiple of 32 (legal for u8/bf16/f32 sublane tiling), capped by the
    per-step byte budget, and shrunk (down to 32) so >= 4 grid steps remain
    whenever the array is big enough (pipelining + megacore sharding).
    """
    if rows < 32:
        return rows                      # full dim -> always a legal block shape
    cap = max(32, _round_down(_STEP_BYTES // max(1, row_bytes), 32))
    rb = min(_round_down(rows, 32), cap)
    while pl.cdiv(rows, rb) < 4 and rb > 32:
        rb = max(32, _round_down(rb // 2, 32))
    return rb


# ---------------------------------------------------------------------------
# C == 4 fused path: packed-word byte extract (transpose fused into the kernel)
# ---------------------------------------------------------------------------

def _c4_fused_kernel(x_ref, o_ref):
    # x_ref: (nb, sb, 128) int32 -- each word packs one pixel's 4 uint8 channels
    #        (channel 0 in the low byte: little-endian view of the NHWC bytes).
    # o_ref: (nb, 4, sb, 128) DTYPE -- NCHW-ordered output tile.
    x = x_ref[...]
    for c in range(4):
        # VPU shift + mask; the & 0xFF also fixes sign bits from the arithmetic
        # shift of the (possibly negative) packed int32 word.
        byte = (x >> (8 * c)) & 0xFF
        o_ref[:, c, :, :] = (byte.astype(jnp.float32) * _SCALE).astype(o_ref.dtype)


def _preprocess_c4_fused(img):
    N, H, W, _ = img.shape
    P = H * W
    S = P // 128
    out_isz = np.dtype(DTYPE).itemsize

    # Pure bit-level reinterpretation of the contiguous NHWC uint8 data: 4
    # channel bytes -> one packed 32-bit word per pixel.  No transpose pass.
    x_packed = jax.lax.bitcast_convert_type(img.reshape(N, P, 4), jnp.int32)
    x_packed = x_packed.reshape(N, S, 128)

    # --- tiling: (nb batch elems) x (sb rows of 128 pixels) per grid step -----
    bytes_per_srow = 128 * 4 + 4 * 128 * out_isz        # packed in + 4-chan out
    rows_cap = max(1, _STEP_BYTES // bytes_per_srow)
    if S <= rows_cap:
        sb = S                                           # full pixel dim
        nb = max(1, min(N, rows_cap // max(1, S)))
    else:
        nb = 1
        sb = max(8, _round_down(min(S, rows_cap), 8))

    def _steps(nb_, sb_):
        return pl.cdiv(N, nb_) * pl.cdiv(S, sb_)

    # Keep >= 4 grid steps when possible (DMA/compute overlap within a TC and
    # >= 2 steps per TensorCore on v7x).
    while _steps(nb, sb) < 4 and nb > 1:
        nb = max(1, nb // 2)
    while _steps(nb, sb) < 4 and sb >= 16:
        sb = max(8, _round_down(sb // 2, 8))

    grid = (pl.cdiv(N, nb), pl.cdiv(S, sb))
    out = pl.pallas_call(
        _c4_fused_kernel,
        out_shape=jax.ShapeDtypeStruct((N, 4, S, 128), DTYPE),
        grid_spec=pltpu.PrefetchScalarGridSpec(
            num_scalar_prefetch=0,
            grid=grid,
            in_specs=[pl.BlockSpec((nb, sb, 128), lambda n, s: (n, s, 0))],
            out_specs=pl.BlockSpec((nb, 4, sb, 128), lambda n, s: (n, 0, s, 0)),
        ),
        compiler_params=pltpu.CompilerParams(
            # Pure elementwise, independent blocks: both axes are parallel.
            # TODO(synk): verify in xprof that both v7x TensorCores get grid
            # slices; if not, switch the leading axis to pltpu.CORE_PARALLEL.
            dimension_semantics=("parallel", "parallel"),
        ),
        cost_estimate=pl.CostEstimate(
            flops=N * 4 * P,
            transcendentals=0,
            bytes_accessed=N * P * 4 + N * 4 * P * out_isz,
        ),
    )(x_packed)
    return out.reshape(N, 4, H, W)


# ---------------------------------------------------------------------------
# General path: uint8-side transpose in XLA + flat lane-dense cast/scale kernel
# ---------------------------------------------------------------------------

def _cast_scale_kernel(x_ref, o_ref):
    o_ref[...] = (x_ref[...].astype(jnp.float32) * _SCALE).astype(o_ref.dtype)


def _cast_scale_2d(x2d):
    rows, width = x2d.shape
    in_isz = np.dtype(x2d.dtype).itemsize
    out_isz = np.dtype(DTYPE).itemsize
    rb = _pick_rows_block(rows, width * (in_isz + out_isz))
    grid = (pl.cdiv(rows, rb),)
    return pl.pallas_call(
        _cast_scale_kernel,
        out_shape=jax.ShapeDtypeStruct((rows, width), DTYPE),
        grid_spec=pltpu.PrefetchScalarGridSpec(
            num_scalar_prefetch=0,
            grid=grid,
            in_specs=[pl.BlockSpec((rb, width), lambda i: (i, 0))],
            out_specs=pl.BlockSpec((rb, width), lambda i: (i, 0)),
        ),
        compiler_params=pltpu.CompilerParams(
            dimension_semantics=("parallel",),
        ),
        cost_estimate=pl.CostEstimate(
            flops=rows * width,
            transcendentals=0,
            bytes_accessed=rows * width * (in_isz + out_isz),
        ),
    )(x2d)


def _cast_scale(x_nchw):
    """Flat, lane-dense cast + *1/255 on an already NCHW-contiguous array."""
    shape = x_nchw.shape
    total = math.prod(shape)
    L = None
    for cand in (2048, 1024, 512, 256, 128):
        if total % cand:
            continue
        if L is None:
            L = cand                       # largest lane width that divides at all
        if total // cand >= 32:
            L = cand                       # prefer one that leaves >= 32 rows
            break
    if L is None:
        # total not a multiple of 128: row-tile a full-last-dim 2-D view
        # (never a single monolithic block, so no VMEM-OOM for odd shapes).
        # TODO(synk): a single row wider than the VMEM budget (pathological W)
        # would additionally need a width split; unreachable for image shapes.
        width = shape[-1]
        x2d = x_nchw.reshape(total // width, width)
    else:
        x2d = x_nchw.reshape(total // L, L)
    return _cast_scale_2d(x2d).reshape(shape)


def preprocess(img_nhwc):
    """img_nhwc: (N, H, W, C) -> (N, C, H, W) in DTYPE, scaled by 1/255."""
    N, H, W, C = img_nhwc.shape
    if C == 4 and img_nhwc.dtype == jnp.uint8 and (H * W) % 128 == 0:
        return _preprocess_c4_fused(img_nhwc)
    # C != 4 (e.g. RGB) or unusual dtypes/shapes: NHWC->NCHW on the narrow-dtype
    # input is the cheapest place for the layout pass; the kernel then does the
    # lane-dense cast + scale.
    x_nchw = jnp.transpose(img_nhwc, (0, 3, 1, 2))
    return _cast_scale(x_nchw)


if __name__ == "__main__":
    key = jax.random.PRNGKey(0)
    N, H, W, C = 2, 16, 16, 4
    # Deterministic synthetic uint8 image batch, NHWC (as the PyTorch forward implies).
    img = jax.random.randint(key, (N, H, W, C), 0, 256, dtype=jnp.int32).astype(jnp.uint8)

    # --- C == 4 fused path ---------------------------------------------------
    out = jax.block_until_ready(jax.jit(preprocess)(img))
    ref = jnp.transpose(img.astype(jnp.float32), (0, 3, 1, 2)) / 255.0
    assert out.shape == (N, C, H, W), out.shape
    assert out.dtype == DTYPE, out.dtype
    # multiply-by-1/255 vs divide-by-255 differs by <= 1 ulp (~1.2e-7)
    assert jnp.allclose(out, ref.astype(DTYPE), atol=1e-6), float(
        jnp.max(jnp.abs(out - ref))
    )

    # --- general (C != 4) path: RGB -----------------------------------------
    img3 = img[..., :3]
    out3 = jax.block_until_ready(jax.jit(preprocess)(img3))
    ref3 = jnp.transpose(img3.astype(jnp.float32), (0, 3, 1, 2)) / 255.0
    assert out3.shape == (N, 3, H, W), out3.shape
    assert out3.dtype == DTYPE, out3.dtype
    assert jnp.allclose(out3, ref3.astype(DTYPE), atol=1e-6), float(
        jnp.max(jnp.abs(out3 - ref3))
    )

    print("KERNEL_OK")
</pallas_src>

<mosaic_0001>
module attributes {stable_mosaic.version = 11 : i64} {
  func.func @_c4_fused_kernel(%arg0: i32, %arg1: i32, %arg2: memref<1x2x128xi32, #tpu.memory_space<vmem>>, %arg3: memref<1x4x2x128xf32, #tpu.memory_space<vmem>>) attributes {dimension_semantics = [#tpu.dimension_semantics<parallel>, #tpu.dimension_semantics<parallel>], iteration_bounds = array<i64: 2, 1>, scalar_prefetch = 0 : i64, scratch_operands = 0 : i64, tpu.core_type = #tpu.core_type<tc>, window_params = [{transform_indices = @transform_0, window_bounds = array<i64: 1, 2, 128>}, {transform_indices = @transform_1, window_bounds = array<i64: 1, 4, 2, 128>}]} {
    %c0 = arith.constant 0 : index
    %c0_0 = arith.constant 0 : index
    %c0_1 = arith.constant 0 : index
    %0 = vector.load %arg2[%c0, %c0_0, %c0_1] : memref<1x2x128xi32, #tpu.memory_space<vmem>>, vector<1x2x128xi32>
    %c0_i32 = arith.constant 0 : i32
    %1 = vector.broadcast %c0_i32 : i32 to vector<1x2x128xi32>
    %2 = arith.shrsi %0, %1 : vector<1x2x128xi32>
    %c255_i32 = arith.constant 255 : i32
    %3 = vector.broadcast %c255_i32 : i32 to vector<1x2x128xi32>
    %4 = arith.andi %2, %3 : vector<1x2x128xi32>
    %5 = arith.sitofp %4 : vector<1x2x128xi32> to vector<1x2x128xf32>
    %cst = arith.constant 0.00392156886 : f32
    %6 = vector.broadcast %cst : f32 to vector<1x2x128xf32>
    %7 = arith.mulf %5, %6 : vector<1x2x128xf32>
    %c0_2 = arith.constant 0 : index
    %c0_3 = arith.constant 0 : index
    %c0_4 = arith.constant 0 : index
    %c0_5 = arith.constant 0 : index
    %8 = vector.load %arg3[%c0_2, %c0_3, %c0_4, %c0_5] : memref<1x4x2x128xf32, #tpu.memory_space<vmem>>, vector<1x1x2x128xf32>
    %9 = vector.shape_cast %8 : vector<1x1x2x128xf32> to vector<1x2x128xf32>
    %10 = vector.shape_cast %7 : vector<1x2x128xf32> to vector<1x1x2x128xf32>
    tpu.vector_store %arg3[%c0_2, %c0_3, %c0_4, %c0_5], %10 {strides = array<i32>} : memref<1x4x2x128xf32, #tpu.memory_space<vmem>>, vector<1x1x2x128xf32>,
    %c8_i32 = arith.constant 8 : i32
    %11 = vector.broadcast %c8_i32 : i32 to vector<1x2x128xi32>
    %12 = arith.shrsi %0, %11 : vector<1x2x128xi32>
    %c255_i32_6 = arith.constant 255 : i32
    %13 = vector.broadcast %c255_i32_6 : i32 to vector<1x2x128xi32>
    %14 = arith.andi %12, %13 : vector<1x2x128xi32>
    %15 = arith.sitofp %14 : vector<1x2x128xi32> to vector<1x2x128xf32>
    %cst_7 = arith.constant 0.00392156886 : f32
    %16 = vector.broadcast %cst_7 : f32 to vector<1x2x128xf32>
    %17 = arith.mulf %15, %16 : vector<1x2x128xf32>
    %c0_8 = arith.constant 0 : index
    %c1 = arith.constant 1 : index
    %c0_9 = arith.constant 0 : index
    %c0_10 = arith.constant 0 : index
    %18 = vector.load %arg3[%c0_8, %c1, %c0_9, %c0_10] : memref<1x4x2x128xf32, #tpu.memory_space<vmem>>, vector<1x1x2x128xf32>
    %19 = vector.shape_cast %18 : vector<1x1x2x128xf32> to vector<1x2x128xf32>
    %20 = vector.shape_cast %17 : vector<1x2x128xf32> to vector<1x1x2x128xf32>
    tpu.vector_store %arg3[%c0_8, %c1, %c0_9, %c0_10], %20 {strides = array<i32>} : memref<1x4x2x128xf32, #tpu.memory_space<vmem>>, vector<1x1x2x128xf32>,
    %c16_i32 = arith.constant 16 : i32
    %21 = vector.broadcast %c16_i32 : i32 to vector<1x2x128xi32>
    %22 = arith.shrsi %0, %21 : vector<1x2x128xi32>
    %c255_i32_11 = arith.constant 255 : i32
    %23 = vector.broadcast %c255_i32_11 : i32 to vector<1x2x128xi32>
    %24 = arith.andi %22, %23 : vector<1x2x128xi32>
    %25 = arith.sitofp %24 : vector<1x2x128xi32> to vector<1x2x128xf32>
    %cst_12 = arith.constant 0.00392156886 : f32
    %26 = vector.broadcast %cst_12 : f32 to vector<1x2x128xf32>
    %27 = arith.mulf %25, %26 : vector<1x2x128xf32>
    %c0_13 = arith.constant 0 : index
    %c2 = arith.constant 2 : index
    %c0_14 = arith.constant 0 : index
    %c0_15 = arith.constant 0 : index
    %28 = vector.load %arg3[%c0_13, %c2, %c0_14, %c0_15] : memref<1x4x2x128xf32, #tpu.memory_space<vmem>>, vector<1x1x2x128xf32>
    %29 = vector.shape_cast %28 : vector<1x1x2x128xf32> to vector<1x2x128xf32>
    %30 = vector.shape_cast %27 : vector<1x2x128xf32> to vector<1x1x2x128xf32>
    tpu.vector_store %arg3[%c0_13, %c2, %c0_14, %c0_15], %30 {strides = array<i32>} : memref<1x4x2x128xf32, #tpu.memory_space<vmem>>, vector<1x1x2x128xf32>,
    %c24_i32 = arith.constant 24 : i32
    %31 = vector.broadcast %c24_i32 : i32 to vector<1x2x128xi32>
    %32 = arith.shrsi %0, %31 : vector<1x2x128xi32>
    %c255_i32_16 = arith.constant 255 : i32
    %33 = vector.broadcast %c255_i32_16 : i32 to vector<1x2x128xi32>
    %34 = arith.andi %32, %33 : vector<1x2x128xi32>
    %35 = arith.sitofp %34 : vector<1x2x128xi32> to vector<1x2x128xf32>
    %cst_17 = arith.constant 0.00392156886 : f32
    %36 = vector.broadcast %cst_17 : f32 to vector<1x2x128xf32>
    %37 = arith.mulf %35, %36 : vector<1x2x128xf32>
    %c0_18 = arith.constant 0 : index
    %c3 = arith.constant 3 : index
    %c0_19 = arith.constant 0 : index
    %c0_20 = arith.constant 0 : index
    %38 = vector.load %arg3[%c0_18, %c3, %c0_19, %c0_20] : memref<1x4x2x128xf32, #tpu.memory_space<vmem>>, vector<1x1x2x128xf32>
    %39 = vector.shape_cast %38 : vector<1x1x2x128xf32> to vector<1x2x128xf32>
    %40 = vector.shape_cast %37 : vector<1x2x128xf32> to vector<1x1x2x128xf32>
    tpu.vector_store %arg3[%c0_18, %c3, %c0_19, %c0_20], %40 {strides = array<i32>} : memref<1x4x2x128xf32, #tpu.memory_space<vmem>>, vector<1x1x2x128xf32>,
    return
  }
  func.func @transform_0(%arg0: i32, %arg1: i32) -> (i32, i32, i32) {
    %c0_i32 = arith.constant 0 : i32
    %c0_i32_0 = arith.constant 0 : i32
    return %arg0, %arg1, %c0_i32 : i32, i32, i32
  }
  func.func @transform_1(%arg0: i32, %arg1: i32) -> (i32, i32, i32, i32) {
    %c0_i32 = arith.constant 0 : i32
    %c0_i32_0 = arith.constant 0 : i32
    %c0_i32_1 = arith.constant 0 : i32
    return %arg0, %c0_i32, %arg1, %c0_i32_0 : i32, i32, i32, i32
  }
}

</mosaic_0001>

<bundles_post_ra>
// kernel: preprocess.1
= control target key start
LH: loop header
LB: loop body
LE: loop exit
PB: predicated region body
PF: predicated region fallthrough
CT: control target
= control target key end

     0   :  { %s321_s6 = smov 0   ;;  %s323_s7 = smov 0   ;;  %s354_s0 = inlined_call_operand.vmem [shape: s32[2,2,128], index: 0, kind: input, shape index: {}]   ;;  %s355_s1 = inlined_call_operand.vmem [shape: f32[2,4,2,128], index: 1, kind: output, shape index: {}]  }
   0x1   :  { %s325_s8 = smov 0  }
   0x2 LB: > { %s23_s9 = sadd.s32 1, %s305_s7  ;;  %p252_p0 = scmp.ge.s32.totalorder %s309_s8, 1  ;;  %s309_s8 = sphi %s325_s8, %s11_s8   ;;  %s305_s7 = sphi %s323_s7, %s357_s7   ;;  %s301_s6 = sphi %s321_s6, %s356_s6  }
   0x3   : > { %p25_p1 = scmp.ge.s32.totalorder %s23_s9, 2  ;;  %p105_p2 = scmp.lt.s32.totalorder %s309_s8, 3 }
   0x5   : > { %s359_s9 = smov (%p25_p1, %s23_s9), 0  ;;  %p106_p3 = pnand %p252_p0, %p105_p2 }
   0x6   : > { %p130_p4 = scmp.lt.s32.totalorder (!%p106_p3), %s301_s6, 1 }
   0x7   : > { %109 = sbr.rel (%p106_p3) target bundleno = 27 (0x1b), region = 24 }
   0xe   : > { %s361_s6 = smov (!%p130_p4, %s301_s6), 1 }
   0xf   : > { %s253_s10 = sshll.u32 %s361_s6, 1  ;;  %s262_s14 = sshll.u32 %s361_s6, 3 }
  0x10   : > { %s136_s13 = scalar_lea.vmem %s354_s0, %s253_s10  ;;  %s144_s17 = scalar_lea.vmem %s355_s1, %s262_s14 }
  0x11   : > { %v145_v0 = vld [vmem:[%s136_s13] sm:$0x3] }
  0x12   : > { %v146_v1 = vand.u32 255, %v145_v0  ;;  %v150_v2 = vshra.s32 %v145_v0, 8  ;;  %v156_v3 = vshra.s32 %v145_v0, 16  ;;  %v258_v4 = vshrl.u32 %v145_v0, 24 }
  0x14   : > { %v147_v5 = vcvt.s32.f32 %v146_v1  ;;  %v151_v6 = vand.u32 255, %v150_v2  ;;  %v157_v7 = vand.u32 255, %v156_v3  ;;  %v164_v8 = vcvt.s32.f32 %v258_v4 }
  0x16   : > { %v148_v9 = vmul.f32 0.003921569, %v147_v5  ;;  %v152_v10 = vcvt.s32.f32 %v151_v6  ;;  %v158_v11 = vcvt.s32.f32 %v157_v7  ;;  %v165_v12 = vmul.f32 0.003921569, %v164_v8 }
  0x18   : > { %149 = vst [vmem:[%s144_s17] sm:$0x3] %v148_v9  ;;  %v153_v13 = vmul.f32 0.003921569, %v152_v10  ;;  %v159_v14 = vmul.f32 0.003921569, %v158_v11 }
  0x19   : > { %259 = vst [vmem:[%s144_s17 + $0x6] sm:$0x3] %v165_v12 }
  0x1a   : > { %256 = vst [vmem:[%s144_s17 + $0x2] sm:$0x3] %v153_v13  ;;  %257 = vst [vmem:[%s144_s17 + $0x4] sm:$0x3] %v159_v14 }
  0x1b PF: > { %s11_s8 = sadd.s32 1, %s309_s8   ;;  %s356_s6 = smov %s305_s7 }
  0x1c   : > { %p8_p5 = scmp.ge.s32.totalorder %s11_s8, 4   ;;  %s357_s7 = smov %s359_s9 }
  0x1e   :  { %10 = sbr.rel (!%p8_p5) target bundleno = 2 (0x2), region = 57 }

</bundles_post_ra>
